<compile_context>
chip_gen: v7x
topology: tpu7x:2x2x1
jax: 0.10.0
libtpu: 0.0.40
codegen_flags: <defaults>
</compile_context>

<pallas_src>
import jax
import jax.numpy as jnp
import numpy as np
from jax.experimental import pallas as pl
from jax.experimental.pallas import tpu as pltpu

_LANE = 128
_SUBLANE = 8


def _round_up(x, m):
    return ((x + m - 1) // m) * m


# ----------------------------------------------------------------------------
# Kernel
# ----------------------------------------------------------------------------
def _decoder_kernel(z_ref, w1_ref, b1_ref, w2_ref, b2_ref, wh_ref, bh_ref,
                    mu_ref, sigma_ref, probs_ref):
    # decoder_nn: Linear -> ReLU -> Linear -> ReLU.
    # bf16 operands on the MXU, f32 accumulation, f32 bias add + ReLU on the VPU.
    h1 = jnp.dot(z_ref[...], w1_ref[...], preferred_element_type=jnp.float32)
    h1 = jnp.maximum(h1 + b1_ref[...], 0.0)

    h2 = jnp.dot(h1.astype(jnp.bfloat16), w2_ref[...],
                 preferred_element_type=jnp.float32)
    h2 = jnp.maximum(h2 + b2_ref[...], 0.0)

    # Fused heads: single MXU pass producing [mu | log_var] in one lane-dense slab.
    heads = jnp.dot(h2.astype(jnp.bfloat16), wh_ref[...],
                    preferred_element_type=jnp.float32) + bh_ref[...]

    D = mu_ref.shape[-1]
    mu = heads[:, :D]
    log_var = heads[:, D:]

    sigma = jnp.exp(0.5 * log_var)            # EUP transcendental
    probs = 1.0 / (1.0 + jnp.exp(-mu))        # stable sigmoid == exp(mu)/(1+exp(mu))

    mu_ref[...] = mu
    sigma_ref[...] = sigma
    probs_ref[...] = probs


# ----------------------------------------------------------------------------
# Parameter handling
# ----------------------------------------------------------------------------
def init_params(key, dim_z, dim_h, img_size):
    """PyTorch-nn.Linear-like init, faithful (unpadded, f32) shapes."""
    D = img_size[0] * img_size[1] * img_size[2]
    ks = jax.random.split(key, 8)

    def lin(kw, kb, fan_in, fan_out):
        bound = 1.0 / np.sqrt(fan_in)
        w = jax.random.uniform(kw, (fan_in, fan_out), jnp.float32, -bound, bound)
        b = jax.random.uniform(kb, (1, fan_out), jnp.float32, -bound, bound)
        return w, b

    w1, b1 = lin(ks[0], ks[1], dim_z, dim_h)
    w2, b2 = lin(ks[2], ks[3], dim_h, 2 * dim_h)
    wmu, bmu = lin(ks[4], ks[5], 2 * dim_h, D)
    wvar, bvar = lin(ks[6], ks[7], 2 * dim_h, D)
    return (w1, b1, w2, b2, wmu, bmu, wvar, bvar)


def pack_params(params):
    """Pad to lane-dense shapes, fuse mu/var heads, cast weights to bf16."""
    w1, b1, w2, b2, wmu, bmu, wvar, bvar = params
    dim_z, dim_h = w1.shape
    d2h = w2.shape[1]
    D = wmu.shape[1]

    DZP = _round_up(dim_z, _LANE)
    DHP = _round_up(dim_h, _LANE)
    D2HP = _round_up(d2h, _LANE)

    def pad2(a, rows, cols):
        return jnp.pad(a, ((0, rows - a.shape[0]), (0, cols - a.shape[1])))

    w1p = pad2(w1, DZP, DHP).astype(jnp.bfloat16)
    b1p = pad2(b1, 1, DHP)                       # f32 bias
    w2p = pad2(w2, DHP, D2HP).astype(jnp.bfloat16)
    b2p = pad2(b2, 1, D2HP)                      # f32 bias
    whp = pad2(jnp.concatenate([wmu, wvar], axis=1), D2HP, 2 * D).astype(jnp.bfloat16)
    bhp = jnp.concatenate([bmu, bvar], axis=1)   # f32 bias, [1, 2*D]
    return (w1p, b1p, w2p, b2p, whp, bhp)


# ----------------------------------------------------------------------------
# Forward wrapper
# ----------------------------------------------------------------------------
@jax.jit
def logit_normal_decoder_forward(z, packed):
    """One fused Pallas call; batch tiled on a parallel grid axis."""
    w1, b1, w2, b2, wh, bh = packed
    B, dz = z.shape
    DZP = w1.shape[0]
    D = wh.shape[1] // 2

    # Batch tiling: sublane-aligned tiles, up to 128 rows each.
    tb = _LANE if B > _LANE else _round_up(B, _SUBLANE)
    Bp = _round_up(B, tb)
    zp = jnp.pad(z, ((0, Bp - B), (0, DZP - dz))).astype(jnp.bfloat16)

    grid = (Bp // tb,)

    full = lambda a: pl.BlockSpec(a.shape, lambda i: (0, 0))
    out_spec = pl.BlockSpec((tb, D), lambda i: (i, 0))

    flops = 2 * Bp * (w1.shape[0] * w1.shape[1]
                      + w2.shape[0] * w2.shape[1]
                      + wh.shape[0] * wh.shape[1])
    transcendentals = 2 * Bp * D
    bytes_accessed = int(
        zp.size * 2
        + sum(a.size * a.dtype.itemsize for a in (w1, b1, w2, b2, wh, bh))
        + 3 * Bp * D * 4)

    mu, sigma, probs = pl.pallas_call(
        _decoder_kernel,
        out_shape=(
            jax.ShapeDtypeStruct((Bp, D), jnp.float32),
            jax.ShapeDtypeStruct((Bp, D), jnp.float32),
            jax.ShapeDtypeStruct((Bp, D), jnp.float32),
        ),
        grid=grid,
        in_specs=[
            pl.BlockSpec((tb, DZP), lambda i: (i, 0)),
            full(w1), full(b1),
            full(w2), full(b2),
            full(wh), full(bh),
        ],
        out_specs=(out_spec, out_spec, out_spec),
        compiler_params=pltpu.CompilerParams(
            dimension_semantics=("parallel",),
            vmem_limit_bytes=32 << 20,
        ),
        cost_estimate=pl.CostEstimate(
            flops=flops,
            transcendentals=transcendentals,
            bytes_accessed=bytes_accessed,
        ),
    )(zp, w1, b1, w2, b2, wh, bh)

    return mu[:B], sigma[:B], probs[:B]


# ----------------------------------------------------------------------------
# Pure-JAX f32 reference of the original (unfused, unpadded) module math.
# ----------------------------------------------------------------------------
def _reference_forward(z, params):
    w1, b1, w2, b2, wmu, bmu, wvar, bvar = params
    h1 = jnp.maximum(z @ w1 + b1, 0.0)
    h2 = jnp.maximum(h1 @ w2 + b2, 0.0)
    mu = h2 @ wmu + bmu
    log_var = h2 @ wvar + bvar
    sigma = jnp.exp(0.5 * log_var)
    probs = jax.nn.sigmoid(mu)
    return mu, sigma, probs


if __name__ == "__main__":
    # Small shapes implied by the module: z ~ [batch, dim_z], output ~ [batch, C*H*W].
    batch = 8
    dim_z = 8
    dim_h = 64
    img_size = (1, 16, 16)   # D = 256

    key = jax.random.PRNGKey(0)
    kz, kp = jax.random.split(key)
    z = jax.random.normal(kz, (batch, dim_z), dtype=jnp.float32)
    params = init_params(kp, dim_z, dim_h, img_size)
    packed = pack_params(params)

    mu, sigma, probs = logit_normal_decoder_forward(z, packed)
    jax.block_until_ready((mu, sigma, probs))

    # Sanity check against the full-precision reference of the same module math.
    # (Kernel uses bf16 weights/activations on the MXU, hence the loose tolerance.)
    mu_r, sigma_r, probs_r = _reference_forward(z, params)
    np.testing.assert_allclose(np.asarray(mu), np.asarray(mu_r), rtol=2e-2, atol=2e-2)
    np.testing.assert_allclose(np.asarray(sigma), np.asarray(sigma_r), rtol=2e-2, atol=2e-2)
    np.testing.assert_allclose(np.asarray(probs), np.asarray(probs_r), rtol=2e-2, atol=2e-2)

    # TODO(synk): log_prob(x) (logit-normal density) is a separate method, not part of
    # forward(); it could be fused as an additional elementwise Pallas kernel if needed.
    print("KERNEL_OK")
</pallas_src>

<mosaic_0001>
module attributes {stable_mosaic.version = 11 : i64} {
  func.func @_decoder_kernel(%arg0: i32, %arg1: memref<8x128xbf16, #tpu.memory_space<vmem>>, %arg2: memref<128x128xbf16, #tpu.memory_space<vmem>>, %arg3: memref<1x128xf32, #tpu.memory_space<vmem>>, %arg4: memref<128x128xbf16, #tpu.memory_space<vmem>>, %arg5: memref<1x128xf32, #tpu.memory_space<vmem>>, %arg6: memref<128x512xbf16, #tpu.memory_space<vmem>>, %arg7: memref<1x512xf32, #tpu.memory_space<vmem>>, %arg8: memref<8x256xf32, #tpu.memory_space<vmem>>, %arg9: memref<8x256xf32, #tpu.memory_space<vmem>>, %arg10: memref<8x256xf32, #tpu.memory_space<vmem>>) attributes {dimension_semantics = [#tpu.dimension_semantics<parallel>], iteration_bounds = array<i64: 1>, scalar_prefetch = 0 : i64, scratch_operands = 0 : i64, tpu.core_type = #tpu.core_type<tc>, window_params = [{transform_indices = @transform_0, window_bounds = array<i64: 8, 128>}, {pipeline_mode = #tpu.pipeline_mode<synchronous>, transform_indices = @transform_1, window_bounds = array<i64: 128, 128>}, {pipeline_mode = #tpu.pipeline_mode<synchronous>, transform_indices = @transform_2, window_bounds = array<i64: 1, 128>}, {pipeline_mode = #tpu.pipeline_mode<synchronous>, transform_indices = @transform_3, window_bounds = array<i64: 128, 128>}, {pipeline_mode = #tpu.pipeline_mode<synchronous>, transform_indices = @transform_4, window_bounds = array<i64: 1, 128>}, {pipeline_mode = #tpu.pipeline_mode<synchronous>, transform_indices = @transform_5, window_bounds = array<i64: 128, 512>}, {pipeline_mode = #tpu.pipeline_mode<synchronous>, transform_indices = @transform_6, window_bounds = array<i64: 1, 512>}, {transform_indices = @transform_7, window_bounds = array<i64: 8, 256>}, {transform_indices = @transform_8, window_bounds = array<i64: 8, 256>}, {transform_indices = @transform_9, window_bounds = array<i64: 8, 256>}]} {
    %c0 = arith.constant 0 : index
    %c0_0 = arith.constant 0 : index
    %0 = vector.load %arg1[%c0, %c0_0] : memref<8x128xbf16, #tpu.memory_space<vmem>>, vector<8x128xbf16>
    %c0_1 = arith.constant 0 : index
    %c0_2 = arith.constant 0 : index
    %1 = vector.load %arg2[%c0_1, %c0_2] : memref<128x128xbf16, #tpu.memory_space<vmem>>, vector<128x128xbf16>
    %cst = arith.constant dense<0.000000e+00> : vector<8x128xf32>
    %2 = tpu.matmul %0, %1, %cst {dimension_numbers = #tpu.dot_dimension_numbers<[1], [0], [0], [1], [0, 0, 1, 1], [], []>} : vector<8x128xbf16>, vector<128x128xbf16>, vector<8x128xf32> -> vector<8x128xf32>
    %c0_3 = arith.constant 0 : index
    %c0_4 = arith.constant 0 : index
    %3 = vector.load %arg3[%c0_3, %c0_4] : memref<1x128xf32, #tpu.memory_space<vmem>>, vector<1x128xf32>
    %4 = vector.broadcast %3 : vector<1x128xf32> to vector<8x128xf32>
    %5 = arith.addf %2, %4 : vector<8x128xf32>
    %cst_5 = arith.constant 0.000000e+00 : f32
    %6 = vector.broadcast %cst_5 : f32 to vector<8x128xf32>
    %7 = arith.maximumf %5, %6 : vector<8x128xf32>
    %8 = arith.truncf %7 : vector<8x128xf32> to vector<8x128xbf16>
    %c0_6 = arith.constant 0 : index
    %c0_7 = arith.constant 0 : index
    %9 = vector.load %arg4[%c0_6, %c0_7] : memref<128x128xbf16, #tpu.memory_space<vmem>>, vector<128x128xbf16>
    %cst_8 = arith.constant dense<0.000000e+00> : vector<8x128xf32>
    %10 = tpu.matmul %8, %9, %cst_8 {dimension_numbers = #tpu.dot_dimension_numbers<[1], [0], [0], [1], [0, 0, 1, 1], [], []>} : vector<8x128xbf16>, vector<128x128xbf16>, vector<8x128xf32> -> vector<8x128xf32>
    %c0_9 = arith.constant 0 : index
    %c0_10 = arith.constant 0 : index
    %11 = vector.load %arg5[%c0_9, %c0_10] : memref<1x128xf32, #tpu.memory_space<vmem>>, vector<1x128xf32>
    %12 = vector.broadcast %11 : vector<1x128xf32> to vector<8x128xf32>
    %13 = arith.addf %10, %12 : vector<8x128xf32>
    %cst_11 = arith.constant 0.000000e+00 : f32
    %14 = vector.broadcast %cst_11 : f32 to vector<8x128xf32>
    %15 = arith.maximumf %13, %14 : vector<8x128xf32>
    %16 = arith.truncf %15 : vector<8x128xf32> to vector<8x128xbf16>
    %c0_12 = arith.constant 0 : index
    %c0_13 = arith.constant 0 : index
    %17 = vector.load %arg6[%c0_12, %c0_13] : memref<128x512xbf16, #tpu.memory_space<vmem>>, vector<128x512xbf16>
    %cst_14 = arith.constant dense<0.000000e+00> : vector<8x512xf32>
    %18 = tpu.matmul %16, %17, %cst_14 {dimension_numbers = #tpu.dot_dimension_numbers<[1], [0], [0], [1], [0, 0, 1, 1], [], []>} : vector<8x128xbf16>, vector<128x512xbf16>, vector<8x512xf32> -> vector<8x512xf32>
    %c0_15 = arith.constant 0 : index
    %c0_16 = arith.constant 0 : index
    %19 = vector.load %arg7[%c0_15, %c0_16] : memref<1x512xf32, #tpu.memory_space<vmem>>, vector<1x512xf32>
    %20 = vector.broadcast %19 : vector<1x512xf32> to vector<8x512xf32>
    %21 = arith.addf %18, %20 : vector<8x512xf32>
    %22 = vector.extract_strided_slice %21 {offsets = [0, 0], sizes = [8, 256], strides = [1, 1]} : vector<8x512xf32> to vector<8x256xf32>
    %23 = vector.extract_strided_slice %21 {offsets = [0, 256], sizes = [8, 256], strides = [1, 1]} : vector<8x512xf32> to vector<8x256xf32>
    %cst_17 = arith.constant 5.000000e-01 : f32
    %24 = vector.broadcast %cst_17 : f32 to vector<8x256xf32>
    %25 = arith.mulf %24, %23 : vector<8x256xf32>
    %26 = math.exp %25 : vector<8x256xf32>
    %cst_18 = arith.constant 0.000000e+00 : f32
    %27 = vector.broadcast %cst_18 : f32 to vector<8x256xf32>
    %28 = arith.subf %27, %22 : vector<8x256xf32>
    %29 = math.exp %28 : vector<8x256xf32>
    %cst_19 = arith.constant 1.000000e+00 : f32
    %30 = vector.broadcast %cst_19 : f32 to vector<8x256xf32>
    %31 = arith.addf %30, %29 : vector<8x256xf32>
    %cst_20 = arith.constant 1.000000e+00 : f32
    %32 = vector.broadcast %cst_20 : f32 to vector<8x256xf32>
    %33 = arith.divf %32, %31 : vector<8x256xf32>
    %c0_21 = arith.constant 0 : index
    %c0_22 = arith.constant 0 : index
    %34 = vector.load %arg8[%c0_21, %c0_22] : memref<8x256xf32, #tpu.memory_space<vmem>>, vector<8x256xf32>
    tpu.vector_store %arg8[%c0_21, %c0_22], %22 {strides = array<i32>} : memref<8x256xf32, #tpu.memory_space<vmem>>, vector<8x256xf32>,
    %c0_23 = arith.constant 0 : index
    %c0_24 = arith.constant 0 : index
    %35 = vector.load %arg9[%c0_23, %c0_24] : memref<8x256xf32, #tpu.memory_space<vmem>>, vector<8x256xf32>
    tpu.vector_store %arg9[%c0_23, %c0_24], %26 {strides = array<i32>} : memref<8x256xf32, #tpu.memory_space<vmem>>, vector<8x256xf32>,
    %c0_25 = arith.constant 0 : index
    %c0_26 = arith.constant 0 : index
    %36 = vector.load %arg10[%c0_25, %c0_26] : memref<8x256xf32, #tpu.memory_space<vmem>>, vector<8x256xf32>
    tpu.vector_store %arg10[%c0_25, %c0_26], %33 {strides = array<i32>} : memref<8x256xf32, #tpu.memory_space<vmem>>, vector<8x256xf32>,
    return
  }
  func.func @transform_0(%arg0: i32) -> (i32, i32) {
    %c0_i32 = arith.constant 0 : i32
    %c0_i32_0 = arith.constant 0 : i32
    return %arg0, %c0_i32 : i32, i32
  }
  func.func @transform_1(%arg0: i32) -> (i32, i32) {
    %c0_i32 = arith.constant 0 : i32
    %c0_i32_0 = arith.constant 0 : i32
    %c0_i32_1 = arith.constant 0 : i32
    return %c0_i32, %c0_i32_0 : i32, i32
  }
  func.func @transform_2(%arg0: i32) -> (i32, i32) {
    %c0_i32 = arith.constant 0 : i32
    %c0_i32_0 = arith.constant 0 : i32
    %c0_i32_1 = arith.constant 0 : i32
    return %c0_i32, %c0_i32_0 : i32, i32
  }
  func.func @transform_3(%arg0: i32) -> (i32, i32) {
    %c0_i32 = arith.constant 0 : i32
    %c0_i32_0 = arith.constant 0 : i32
    %c0_i32_1 = arith.constant 0 : i32
    return %c0_i32, %c0_i32_0 : i32, i32
  }
  func.func @transform_4(%arg0: i32) -> (i32, i32) {
    %c0_i32 = arith.constant 0 : i32
    %c0_i32_0 = arith.constant 0 : i32
    %c0_i32_1 = arith.constant 0 : i32
    return %c0_i32, %c0_i32_0 : i32, i32
  }
  func.func @transform_5(%arg0: i32) -> (i32, i32) {
    %c0_i32 = arith.constant 0 : i32
    %c0_i32_0 = arith.constant 0 : i32
    %c0_i32_1 = arith.constant 0 : i32
    return %c0_i32, %c0_i32_0 : i32, i32
  }
  func.func @transform_6(%arg0: i32) -> (i32, i32) {
    %c0_i32 = arith.constant 0 : i32
    %c0_i32_0 = arith.constant 0 : i32
    %c0_i32_1 = arith.constant 0 : i32
    return %c0_i32, %c0_i32_0 : i32, i32
  }
  func.func @transform_7(%arg0: i32) -> (i32, i32) {
    %c0_i32 = arith.constant 0 : i32
    %c0_i32_0 = arith.constant 0 : i32
    return %arg0, %c0_i32 : i32, i32
  }
  func.func @transform_8(%arg0: i32) -> (i32, i32) {
    %c0_i32 = arith.constant 0 : i32
    %c0_i32_0 = arith.constant 0 : i32
    return %arg0, %c0_i32 : i32, i32
  }
  func.func @transform_9(%arg0: i32) -> (i32, i32) {
    %c0_i32 = arith.constant 0 : i32
    %c0_i32_0 = arith.constant 0 : i32
    return %arg0, %c0_i32 : i32, i32
  }
}

</mosaic_0001>

<bundles_post_ra>
// kernel: logit_normal_decoder_forward.1
= control target key start
LH: loop header
LB: loop body
LE: loop exit
PB: predicated region body
PF: predicated region fallthrough
CT: control target
= control target key end

     0   :  { %15 = vsyncpa [#allocation3], 0  ;;  %s1154_s0 = inlined_call_operand.vmem [shape: bf16[8,128], index: 0, kind: input, shape index: {}]   ;;  %s1155_s1 = inlined_call_operand.hbm [shape: bf16[128,128], index: 1, kind: input, shape index: {}]   ;;  %s1156_s2 = inlined_call_operand.vmem [shape: f32[1,128], index: 2, kind: input, shape index: {}]   ;;  %s1157_s3 = inlined_call_operand.hbm [shape: bf16[128,128], index: 3, kind: input, shape index: {}]   ;;  %s1158_s4 = inlined_call_operand.vmem [shape: f32[1,128], index: 4, kind: input, shape index: {}]   ;;  %s1159_s5 = inlined_call_operand.hbm [shape: bf16[128,512], index: 5, kind: input, shape index: {}]   ;;  %s1160_s6 = inlined_call_operand.vmem [shape: f32[1,512], index: 6, kind: input, shape index: {}]   ;;  %s1161_s7 = inlined_call_operand.hbm [shape: f32[8,256], index: 7, kind: output, shape index: {0}]   ;;  %s1162_s8 = inlined_call_operand.hbm [shape: f32[8,256], index: 8, kind: output, shape index: {1}]   ;;  %s1163_s9 = inlined_call_operand.hbm [shape: f32[8,256], index: 9, kind: output, shape index: {2}]  }
   0x1   :  { %16 = vsyncpa [#allocation6], 0 }
   0x2   :  { %17 = vsyncpa [#allocation4], 0 }
   0x3   :  { %18 = vsyncpa [#allocation10], 0  ;;  %s1000_s30 = smov [#allocation5]   ;;  %s1001_s11 = smov [#allocation2]  }
   0x4   :  { %s40_s10 = sshll.u32 %s1000_s30, 4  ;;  %s26_s12 = sshll.u32 %s1001_s11, 4  ;;  %s41_s10 = int_to_ptr.vmem [resolvable:$true] %s40_s10  ;;  %s1063_s12 = int_to_ptr.vmem [resolvable:$true] %s26_s12 }
   0x5   :  { %s860_s15 = scalar_lea.hbm %s1157_s3, 1024 }
   0x6   :  { %p861_p0 = scmp.ne.s32.totalorder %s1157_s3, %s860_s15  ;;  %p864_p1 = scmp.lt.u32.totalorder %s860_s15, %s1157_s3 }
   0x8   :  { %p866_p2 = pnand %p864_p1, %p861_p0 }
   0xa   :  { %869 = shalt.err (!%p866_p2)
}
   0xb   :  { %s870_s20 = scalar_lea.vmem %s41_s10, 1024  ;;  %p875_p4 = scmp.lt.s32.totalorder %s41_s10, %s41_s10 }
   0xc   :  { %p871_p3 = scmp.ne.s32.totalorder %s41_s10, %s870_s20  ;;  %p876_p5 = scmp.lt.s32.totalorder %s870_s20, %s870_s20 }
   0xe   :  { %p877_p6 = por %p876_p5, %p875_p4 }
  0x10   :  { %p878_p7 = pnand %p877_p6, %p871_p3 }
  0x12   :  { %881 = shalt.err (!%p878_p7)
}
  0x13   :  { %s1002_s21 = smov 64   ;;  %s1003_s22 = smov 4  }
  0x14   :  { %46 = dma.hbm_to_vmem [thread:$0]  %s1157_s3, 1024, %s41_s10, [#allocation6], %s1002_s21, %s1002_s21, %s1003_s22  }
  0x15   :  { %s882_s27 = scalar_lea.hbm %s1155_s1, 1024 }
  0x16   :  { %p883_p8 = scmp.ne.s32.totalorder %s1155_s1, %s882_s27  ;;  %p886_p9 = scmp.lt.u32.totalorder %s882_s27, %s1155_s1 }
  0x18   :  { %p888_p10 = pnand %p886_p9, %p883_p8 }
  0x1a   :  { %891 = shalt.err (!%p888_p10)
}
  0x1b   :  { %s892_s13 = scalar_lea.vmem %s1063_s12, 1024  ;;  %p897_p12 = scmp.lt.s32.totalorder %s1063_s12, %s1063_s12 }
  0x1c   :  { %p893_p11 = scmp.ne.s32.totalorder %s1063_s12, %s892_s13  ;;  %p898_p13 = scmp.lt.s32.totalorder %s892_s13, %s892_s13 }
  0x1e   :  { %p899_p0 = por %p898_p13, %p897_p12 }
  0x20   :  { %p900_p1 = pnand %p899_p0, %p893_p11 }
  0x22   :  { %903 = shalt.err (!%p900_p1)
}
  0x23   :  { %32 = dma.hbm_to_vmem [thread:$0]  %s1155_s1, 1024, %s1063_s12, [#allocation3], %s1002_s21, %s1002_s21, %s1003_s22  }
  0x24   :  { %s1004_s14 = smov [#allocation7]   ;;  %s904_s18 = scalar_lea.hbm %s1159_s5, 4096 }
  0x25   :  { %s54_s15 = sshll.u32 %s1004_s14, 4  ;;  %p905_p2 = scmp.ne.s32.totalorder %s1159_s5, %s904_s18  ;;  %s55_s15 = int_to_ptr.vmem [resolvable:$true] %s54_s15 }
  0x26   :  { %p908_p3 = scmp.lt.u32.totalorder %s904_s18, %s1159_s5 }
  0x28   :  { %p910_p4 = pnand %p908_p3, %p905_p2 }
  0x2a   :  { %913 = shalt.err (!%p910_p4)
}
  0x2b   :  { %s914_s25 = scalar_lea.vmem %s55_s15, 4096  ;;  %p919_p6 = scmp.lt.s32.totalorder %s55_s15, %s55_s15 }
  0x2c   :  { %p915_p5 = scmp.ne.s32.totalorder %s55_s15, %s914_s25  ;;  %p920_p7 = scmp.lt.s32.totalorder %s914_s25, %s914_s25 }
  0x2e   :  { %p921_p8 = por %p920_p7, %p919_p6 }
  0x30   :  { %p922_p9 = pnand %p921_p8, %p915_p5 }
  0x32   :  { %925 = shalt.err (!%p922_p9)
}
  0x33   :  { %s1005_s1 = smov 256   ;;  %s1006_s12 = smov 16  }
  0x34   :  { %60 = dma.hbm_to_vmem [thread:$0]  %s1159_s5, 4096, %s55_s15, [#allocation6], %s1005_s1, %s1005_s1, %s1006_s12  }
  0x35   :  { %992 = dma.done.wait [#allocation3], 1024  }
  0x36   :  { %993 = vsyncadd [#allocation3], 4294966272 }
  0x37   :  { %994 = dma.done.wait [#allocation6], 5120  }
  0x38   :  { %995 = vsyncadd [#allocation6], 4294962176  ;;  %v1007_v0 = vmov 0.0   ;;  %vm1008_vm0 = vmmov 0   ;;  %v784_v1 = vld [vmem:[#allocation2] sm:$0xff]   ;;  %v785_v2 = vld [vmem:[#allocation2 + $0x8] sm:$0xff]  }
  0x39   :  { %731 = vmatprep.subr.bf16.mxu0 %v1007_v0  ;;  %747 = vmatprep.mubr.msk.bf16.mxu0 %vm1008_vm0, %v1007_v0  ;;  %v786_v3 = vld [vmem:[#allocation2 + $0x10] sm:$0xff]   ;;  %v792_v4 = vld [vmem:[#allocation5] sm:$0xff]   ;;  %v787_v5 = vld [vmem:[#allocation2 + $0x18] sm:$0xff]   ;;  %v1009_v58 = vmov 0  }
  0x3a   :  { %751 = vmatprep.subr.bf16.mxu1 %v1007_v0  ;;  %767 = vmatprep.mubr.msk.bf16.mxu1 %vm1008_vm0, %v1007_v0  ;;  %v793_v6 = vld [vmem:[#allocation5 + $0x8] sm:$0xff]   ;;  %v788_v7 = vld [vmem:[#allocation2 + $0x20] sm:$0xff]   ;;  %v794_v8 = vld [vmem:[#allocation5 + $0x10] sm:$0xff]  }
  0x3b   :  { %732 = vmatpush3.bf16.msra.mxu0 %v784_v1  ;;  %752 = vmatpush3.bf16.msra.mxu1 %v792_v4  ;;  %v789_v9 = vld [vmem:[#allocation2 + $0x28] sm:$0xff]   ;;  %v795_v10 = vld [vmem:[#allocation5 + $0x18] sm:$0xff]   ;;  %v790_v11 = vld [vmem:[#allocation2 + $0x30] sm:$0xff]  }
  0x3c   :  { %733 = vmatprep.subr.bf16.mxu0 %v1007_v0  ;;  %753 = vmatprep.subr.bf16.mxu1 %v1007_v0  ;;  %v796_v12 = vld [vmem:[#allocation5 + $0x20] sm:$0xff]   ;;  %v791_v13 = vld [vmem:[#allocation2 + $0x38] sm:$0xff]   ;;  %v797_v14 = vld [vmem:[#allocation5 + $0x28] sm:$0xff]  }
  0x3d   :  { %v73_v15 = vld [vmem:[%s1154_s0] sm:$0xf]  ;;  %v798_v16 = vld [vmem:[#allocation5 + $0x30] sm:$0xff]   ;;  %v799_v17 = vld [vmem:[#allocation5 + $0x38] sm:$0xff]  }
  0x3e   :  { %v800_v18 = vld [vmem:[#allocation7] ss:$16 sps:$4 sm:$0xff]   ;;  %v802_v19 = vld [vmem:[#allocation7 + $0x4] ss:$16 sps:$4 sm:$0xff]   ;;  %v805_v20 = vld [vmem:[#allocation7 + $0xc] ss:$16 sps:$4 sm:$0xff]  }
  0x3f   :  { %734 = vmatpush3.bf16.msra.mxu0 %v785_v2  ;;  %754 = vmatpush3.bf16.msra.mxu1 %v793_v6  ;;  %v808_v21 = vld [vmem:[#allocation7 + $0x24] ss:$16 sps:$4 sm:$0xff]   ;;  %v806_v22 = vld [vmem:[#allocation7 + $0x20] ss:$16 sps:$4 sm:$0xff]   ;;  %v803_v40 = vld [vmem:[#allocation7 + $0x8] ss:$16 sps:$4 sm:$0xff]  }
  0x40   :  { %735 = vmatprep.subr.bf16.mxu0 %v1007_v0  ;;  %755 = vmatprep.subr.bf16.mxu1 %v1007_v0  ;;  %v814_v23 = vld [vmem:[#allocation7 + $0x44] ss:$16 sps:$4 sm:$0xff]   ;;  %v812_v24 = vld [vmem:[#allocation7 + $0x40] ss:$16 sps:$4 sm:$0xff]   ;;  %v811_v42 = vld [vmem:[#allocation7 + $0x2c] ss:$16 sps:$4 sm:$0xff]  }
  0x41   :  { %v820_v25 = vld [vmem:[#allocation7 + $0x64] ss:$16 sps:$4 sm:$0xff]   ;;  %v818_v26 = vld [vmem:[#allocation7 + $0x60] ss:$16 sps:$4 sm:$0xff]   ;;  %v809_v43 = vld [vmem:[#allocation7 + $0x28] ss:$16 sps:$4 sm:$0xff]  }
  0x42   :  { %v826_v27 = vld [vmem:[#allocation7 + $0x84] ss:$16 sps:$4 sm:$0xff]   ;;  %v824_v28 = vld [vmem:[#allocation7 + $0x80] ss:$16 sps:$4 sm:$0xff]   ;;  %v817_v44 = vld [vmem:[#allocation7 + $0x4c] ss:$16 sps:$4 sm:$0xff]  }
  0x43   :  { %736 = vmatpush3.bf16.msra.mxu0 %v786_v3  ;;  %756 = vmatpush3.bf16.msra.mxu1 %v794_v8  ;;  %v832_v29 = vld [vmem:[#allocation7 + $0xa4] ss:$16 sps:$4 sm:$0xff]   ;;  %v830_v30 = vld [vmem:[#allocation7 + $0xa0] ss:$16 sps:$4 sm:$0xff]   ;;  %v815_v45 = vld [vmem:[#allocation7 + $0x48] ss:$16 sps:$4 sm:$0xff]   ;;  %v334_v3 = vlaneseq }
  0x44   :  { %737 = vmatprep.subr.bf16.mxu0 %v1007_v0  ;;  %757 = vmatprep.subr.bf16.mxu1 %v1007_v0  ;;  %v838_v31 = vld [vmem:[#allocation7 + $0xc4] ss:$16 sps:$4 sm:$0xff]   ;;  %v836_v32 = vld [vmem:[#allocation7 + $0xc0] ss:$16 sps:$4 sm:$0xff]   ;;  %v823_v46 = vld [vmem:[#allocation7 + $0x6c] ss:$16 sps:$4 sm:$0xff]  }
  0x45   :  { %v663_v33 = vld [vmem:[%s1156_s2] ss:$0 sm:$0xff]  ;;  %v821_v47 = vld [vmem:[#allocation7 + $0x68] ss:$16 sps:$4 sm:$0xff]   ;;  %v829_v48 = vld [vmem:[#allocation7 + $0x8c] ss:$16 sps:$4 sm:$0xff]  }
  0x46   :  { %v827_v49 = vld [vmem:[#allocation7 + $0x88] ss:$16 sps:$4 sm:$0xff]   ;;  %v835_v50 = vld [vmem:[#allocation7 + $0xac] ss:$16 sps:$4 sm:$0xff]   ;;  %v844_v54 = vld [vmem:[#allocation7 + $0xe4] ss:$16 sps:$4 sm:$0xff]  }
  0x47   :  { %738 = vmatpush3.bf16.msra.mxu0 %v787_v5  ;;  %758 = vmatpush3.bf16.msra.mxu1 %v795_v10  ;;  %v833_v51 = vld [vmem:[#allocation7 + $0xa8] ss:$16 sps:$4 sm:$0xff]   ;;  %v841_v52 = vld [vmem:[#allocation7 + $0xcc] ss:$16 sps:$4 sm:$0xff]   ;;  %v842_v56 = vld [vmem:[#allocation7 + $0xe0] ss:$16 sps:$4 sm:$0xff]  }
  0x48   :  { %739 = vmatprep.subr.bf16.mxu0 %v1007_v0  ;;  %759 = vmatprep.subr.bf16.mxu1 %v1007_v0  ;;  %v839_v53 = vld [vmem:[#allocation7 + $0xc8] ss:$16 sps:$4 sm:$0xff]   ;;  %v847_v55 = vld [vmem:[#allocation7 + $0xec] ss:$16 sps:$4 sm:$0xff]   ;;  %v672_v59 = vld [vmem:[%s1158_s4] ss:$0 sm:$0xff] }
  0x49   :  { %v845_v57 = vld [vmem:[#allocation7 + $0xe8] ss:$16 sps:$4 sm:$0xff]   ;;  %v335_v4 = vshrl.u32 %v334_v3, 7  ;;  %s1010_s4 = smov [#allocation8]  }
  0x4a   :  { %s626_s11 = sshll.u32 %s1010_s4, 4  ;;  %s627_s11 = int_to_ptr.vmem [resolvable:$true] %s626_s11 }
  0x4b   :  { %740 = vmatpush3.bf16.msra.mxu0 %v788_v7  ;;  %760 = vmatpush3.bf16.msra.mxu1 %v796_v12  ;;  %v336_v5 = vsub.s32 0, %v335_v4  ;;  %v344_v6 = vsub.s32 2, %v335_v4  ;;  %v332_v7 = vld [vmem:[%s1160_s6] sm:$0xf]  ;;  %v340_v8 = vsub.s32 1, %v335_v4  ;;  %s926_s6 = scalar_lea.vmem %s627_s11, 256  ;;  %p931_p11 = scmp.lt.s32.totalorder %s627_s11, %s627_s11 }
  0x4c   :  { %741 = vmatprep.subr.bf16.mxu0 %v1007_v0  ;;  %761 = vmatprep.subr.bf16.mxu1 %v1007_v0  ;;  %p927_p10 = scmp.ne.s32.totalorder %s627_s11, %s926_s6  ;;  %p932_p12 = scmp.lt.s32.totalorder %s926_s6, %s926_s6 }
  0x4d   :  { %v337_v10 = vrot.slane %v332_v7, %v336_v5  ;;  %v341_v12 = vrot.slane %v332_v7, %v340_v8 }
  0x4e   :  { %p933_p13 = por %p932_p12, %p931_p11 }
  0x4f   :  { %742 = vmatpush3.bf16.msra.mxu0 %v789_v9  ;;  %762 = vmatpush3.bf16.msra.mxu1 %v797_v14  ;;  %v348_v9 = vsub.s32 3, %v335_v4 }
  0x50   :  { %743 = vmatprep.subr.bf16.mxu0 %v1007_v0  ;;  %763 = vmatprep.subr.bf16.mxu1 %v1007_v0  ;;  %p934_p0 = pnand %p933_p13, %p927_p10 }
  0x53   :  { %744 = vmatpush3.bf16.msra.mxu0 %v790_v11  ;;  %764 = vmatpush3.bf16.msra.mxu1 %v798_v16  ;;  %v345_v11 = vrot.slane %v332_v7, %v344_v6 }
  0x54   :  { %745 = vmatprep.subr.bf16.mxu0 %v1007_v0  ;;  %765 = vmatprep.subr.bf16.mxu1 %v1007_v0 }
  0x57   :  { %746 = vmatpush3.bf16.msra.mxu0 %v791_v13  ;;  %766 = vmatpush3.bf16.msra.mxu1 %v799_v17  ;;  %v349_v13 = vrot.slane %v332_v7, %v348_v9 }
  0x58   :  { %514 = vmatprep.subr.bf16.mxu0 %v802_v19  ;;  %555 = vmatprep.subr.bf16.mxu1 %v805_v20 }
  0x5a   :  { %748 = vmatmul.mubr.bf16.vlgmr.msra.gmra.mrb[0].mxu0 %v73_v15 }
  0x5b   :  { %515 = vmatpush1.bf16.msra.mxu0 %v800_v18  ;;  %546 = vmatprep.mubr.bf16.mxu0 %v1009_v58 }
  0x5c   :  { %516 = vmatprep.subr.bf16.mxu0 %v808_v21 }
  0x5f   :  { %517 = vmatpush1.bf16.msra.mxu0 %v806_v22 }
  0x60   :  { %518 = vmatprep.subr.bf16.mxu0 %v814_v23 }
  0x63   :  { %519 = vmatpush1.bf16.msra.mxu0 %v812_v24 }
  0x64   :  { %520 = vmatprep.subr.bf16.mxu0 %v820_v25 }
  0x67   :  { %521 = vmatpush1.bf16.msra.mxu0 %v818_v26 }
  0x68   :  { %522 = vmatprep.subr.bf16.mxu0 %v826_v27 }
  0x6b   :  { %523 = vmatpush1.bf16.msra.mxu0 %v824_v28 }
  0x6c   :  { %524 = vmatprep.subr.bf16.mxu0 %v832_v29 }
  0x6f   :  { %525 = vmatpush1.bf16.msra.mxu0 %v830_v30 }
  0x70   :  { %526 = vmatprep.subr.bf16.mxu0 %v838_v31 }
  0x73   :  { %527 = vmatpush1.bf16.msra.mxu0 %v836_v32 }
  0x74   :  { %528 = vmatprep.subr.bf16.mxu0 %v844_v54 }
  0x77   :  { %529 = vmatpush1.bf16.msra.mxu0 %v842_v56 }
 0x12d   :  { %v179_v34 = vpop.f32.mrb[0].mxu0 }
 0x12e   :  { %v180_v35 = vadd.f32 %v663_v33, %v179_v34  ;;  %v749_v36 = vpop.f32.mrb[1].mxu0 }
 0x12f   :  { %v182_v37 = vpop.f32.mrb[2].mxu0 }
 0x130   :  { %v185_v38 = vmax.f32 %v180_v35, 0.0  ;;  %v750_v39 = vpop.f32.mrb[3].mxu0 }
 0x132   :  { %v186_v41 = vpack.c.bf16 %v185_v38, %v185_v38 }
 0x134   :  { %768 = vmatmul.mubr.bf16.vlgmr.msra.gmra.mrb[0].mxu1 %v186_v41 }
 0x135   :  { %556 = vmatpush1.bf16.msra.mxu1 %v803_v40  ;;  %587 = vmatprep.mubr.bf16.mxu1 %v1009_v58 }
 0x136   :  { %557 = vmatprep.subr.bf16.mxu1 %v811_v42 }
 0x139   :  { %558 = vmatpush1.bf16.msra.mxu1 %v809_v43 }
 0x13a   :  { %559 = vmatprep.subr.bf16.mxu1 %v817_v44 }
 0x13d   :  { %560 = vmatpush1.bf16.msra.mxu1 %v815_v45 }
 0x13e   :  { %561 = vmatprep.subr.bf16.mxu1 %v823_v46 }
 0x141   :  { %562 = vmatpush1.bf16.msra.mxu1 %v821_v47 }
 0x142   :  { %563 = vmatprep.subr.bf16.mxu1 %v829_v48 }
 0x145   :  { %564 = vmatpush1.bf16.msra.mxu1 %v827_v49 }
 0x146   :  { %565 = vmatprep.subr.bf16.mxu1 %v835_v50 }
 0x149   :  { %566 = vmatpush1.bf16.msra.mxu1 %v833_v51 }
 0x14a   :  { %567 = vmatprep.subr.bf16.mxu1 %v841_v52 }
 0x14d   :  { %568 = vmatpush1.bf16.msra.mxu1 %v839_v53 }
 0x14e   :  { %569 = vmatprep.subr.bf16.mxu1 %v847_v55 }
 0x151   :  { %570 = vmatpush1.bf16.msra.mxu1 %v845_v57 }
 0x207   :  { %v292_v60 = vpop.f32.mrb[0].mxu1 }
 0x208   :  { %v293_v61 = vadd.f32 %v672_v59, %v292_v60  ;;  %v769_v62 = vpop.f32.mrb[1].mxu1 }
 0x209   :  { %v295_v63 = vpop.f32.mrb[2].mxu1 }
 0x20a   :  { %v298_v0 = vmax.f32 %v293_v61, 0.0  ;;  %v770_v1 = vpop.f32.mrb[3].mxu1 }
 0x20c   :  { %v299_v2 = vpack.c.bf16 %v298_v0, %v298_v0 }
 0x20e   :  { %547 = vmatmul.mubr.bf16.vlgmr.msra.gmra.mrb[4].mxu0 %v299_v2  ;;  %588 = vmatmul.mubr.bf16.vlgmr.msra.gmra.mrb[4].mxu1 %v299_v2 }
 0x2e1   :  { %v548_v14 = vpop.f32.mrb[4].mxu0  ;;  %v589_v15 = vpop.f32.mrb[4].mxu1 }
 0x2e2   :  { %v549_v16 = vadd.f32 %v548_v14, %v337_v10  ;;  %v590_v17 = vadd.f32 %v589_v15, %v345_v11  ;;  %v550_v18 = vpop.f32.mrb[5].mxu0  ;;  %v591_v19 = vpop.f32.mrb[5].mxu1 }
 0x2e3   :  { %v551_v20 = vadd.f32 %v550_v18, %v341_v12  ;;  %v592_v21 = vadd.f32 %v591_v19, %v349_v13  ;;  %v552_v22 = vpop.f32.mrb[6].mxu0  ;;  %v593_v23 = vpop.f32.mrb[6].mxu1 }
 0x2e4   :  { %v602_v24 = vsub.f32 0.0, %v549_v16  ;;  %614 = vst [vmem:[#allocation8] sm:$0xff] %v549_v16  ;;  %v596_v25 = vmul.f32 0.5, %v590_v17  ;;  %v553_v26 = vpop.f32.mrb[7].mxu0  ;;  %v594_v27 = vpop.f32.mrb[7].mxu1 }
 0x2e5   :  { %v603_v28 = vsub.f32 0.0, %v551_v20  ;;  %615 = vst [vmem:[#allocation8 + $0x8] sm:$0xff] %v551_v20  ;;  %v597_v29 = vmul.f32 0.5, %v592_v21 }
 0x2e6   :  { %v604_v30 = vmul.f32 1.442695, %v602_v24  ;;  %v598_v31 = vmul.f32 1.442695, %v596_v25 }
 0x2e7   :  { %937 = shalt.err (!%p934_p0)
}
 0x2e8   :  { %s938_s10 = scalar_lea.hbm %s1161_s7, 256 }
 0x2e9   :  { %p939_p1 = scmp.ne.s32.totalorder %s1161_s7, %s938_s10  ;;  %p942_p2 = scmp.lt.u32.totalorder %s938_s10, %s1161_s7 }
 0x2eb   :  { %p944_p3 = pnand %p942_p2, %p939_p1 }
 0x2ed   :  { %947 = shalt.err (!%p944_p3)
}
 0x2ee   :  { %629 = dma.vmem_to_hbm [thread:$0]  %s627_s11, 256, %s1161_s7, [#allocation4]   ;;  %v606_v32 = vmul.f32 1.442695, %v603_v28  ;;  %v600_v33 = vmul.f32 1.442695, %v597_v29  ;;  %848 = vpow2.f32 %v604_v30 }
 0x2ef   :  { %850 = vpow2.f32 %v598_v31  ;;  %s1011_s20 = smov [#allocation9]  }
 0x2f0   :  { %852 = vpow2.f32 %v606_v32  ;;  %s636_s23 = sshll.u32 %s1011_s20, 4  ;;  %s637_s23 = int_to_ptr.vmem [resolvable:$true] %s636_s23 }
 0x2f1   :  { %854 = vpow2.f32 %v600_v33  ;;  %s948_s7 = scalar_lea.vmem %s637_s23, 256  ;;  %p953_p5 = scmp.lt.s32.totalorder %s637_s23, %s637_s23 }
 0x2f2   :  { %p949_p4 = scmp.ne.s32.totalorder %s637_s23, %s948_s7  ;;  %p954_p6 = scmp.lt.s32.totalorder %s948_s7, %s948_s7 }
 0x2f4   :  { %p955_p7 = por %p954_p6, %p953_p5 }
 0x2f6   :  { %p956_p8 = pnand %p955_p7, %p949_p4 }
 0x2f8   :  { %v849_v34 = vpop.eup %848 }
 0x2f9   :  { %v851_v35 = vpop.eup %850  ;;  %v608_v36 = vadd.f32 1.0, %v849_v34 }
 0x2fa   :  { %v853_v37 = vpop.eup %852  ;;  %616 = vst [vmem:[#allocation9] sm:$0xff] %v851_v35 }
 0x2fb   :  { %v855_v38 = vpop.eup %854  ;;  %856 = vrcp.f32 %v608_v36  ;;  %v609_v39 = vadd.f32 1.0, %v853_v37 }
 0x2fc   :  { %617 = vst [vmem:[#allocation9 + $0x8] sm:$0xff] %v855_v38 }
 0x2fd   :  { %858 = vrcp.f32 %v609_v39 }
 0x2fe   :  { %959 = shalt.err (!%p956_p8)
}
 0x2ff   :  { %s960_s1 = scalar_lea.hbm %s1162_s8, 256 }
 0x300   :  { %p961_p9 = scmp.ne.s32.totalorder %s1162_s8, %s960_s1  ;;  %p964_p10 = scmp.lt.u32.totalorder %s960_s1, %s1162_s8 }
 0x302   :  { %p966_p11 = pnand %p964_p10, %p961_p9 }
 0x304   :  { %969 = shalt.err (!%p966_p11)
}
 0x305   :  { %639 = dma.vmem_to_hbm [thread:$0]  %s637_s23, 256, %s1162_s8, [#allocation10]   ;;  %v857_v40 = vpop.eup %856 }
 0x306   :  { %s1012_s27 = smov [#allocation11]   ;;  %618 = vst [vmem:[#allocation11] sm:$0xff] %v857_v40 }
 0x307   :  { %s646_s2 = sshll.u32 %s1012_s27, 4  ;;  %v859_v41 = vpop.eup %858  ;;  %s647_s2 = int_to_ptr.vmem [resolvable:$true] %s646_s2 }
 0x308   :  { %619 = vst [vmem:[#allocation11 + $0x8] sm:$0xff] %v859_v41  ;;  %s970_s28 = scalar_lea.vmem %s647_s2, 256  ;;  %p975_p13 = scmp.lt.s32.totalorder %s647_s2, %s647_s2 }
 0x309   :  { %p971_p12 = scmp.ne.s32.totalorder %s647_s2, %s970_s28  ;;  %p976_p0 = scmp.lt.s32.totalorder %s970_s28, %s970_s28 }
 0x30b   :  { %p977_p1 = por %p976_p0, %p975_p13 }
 0x30d   :  { %p978_p2 = pnand %p977_p1, %p971_p12 }
 0x30f   :  { %981 = shalt.err (!%p978_p2)
}
 0x310   :  { %s982_s4 = scalar_lea.hbm %s1163_s9, 256 }
 0x311   :  { %p983_p3 = scmp.ne.s32.totalorder %s1163_s9, %s982_s4  ;;  %p986_p4 = scmp.lt.u32.totalorder %s982_s4, %s1163_s9 }
 0x313   :  { %p988_p5 = pnand %p986_p4, %p983_p3 }
 0x315   :  { %991 = shalt.err (!%p988_p5)
}
 0x316   :  { %649 = dma.vmem_to_hbm [thread:$0]  %s647_s2, 256, %s1163_s9, [#allocation10]  }
 0x317   :  { %996 = dma.done.wait [#allocation4], 256  }
 0x318   :  { %997 = vsyncadd [#allocation4], 4294967040 }
 0x319   :  { %998 = dma.done.wait [#allocation10], 512  }
 0x31a   :  { %999 = vsyncadd [#allocation10], 4294966784 }
 0x31b   :  { %659 = vsyncpa [#allocation3], 1 }
 0x31c   :  { %660 = vsyncpa [#allocation6], 1 }
 0x31d   :  { %661 = vsyncpa [#allocation4], 1 }
 0x31e   :  { %662 = vsyncpa [#allocation10], 1 }

</bundles_post_ra>
